<compile_context>
chip_gen: v5e
topology: v5e:2x2
jax: 0.10.0
libtpu: 0.0.40
codegen_flags: <defaults>
</compile_context>

<pallas_src>
import jax
import jax.numpy as jnp
from jax.experimental import pallas as pl
from jax.experimental.pallas import tpu as pltpu

IN_DIM = 28 * 28   # 784
H1 = 128
H2 = 64
H2_PAD = 128       # lane-dense padded width for the hidden-2 activations
OUT = 10
OUT_PAD = 16       # small padded output width (full-array last dim => legal block)


def _round_up(x, m):
    return ((x + m - 1) // m) * m


def mlp_kernel(x_ref, w1_ref, b1_ref, w2_ref, b2_ref, w3_ref, b3_ref, o_ref):
    # x tile: (TB, 784) f32 (cast to bf16 in-VMEM); weights bf16; biases f32;
    # output tile: (TB, 16) f32.
    x = x_ref[...].astype(jnp.bfloat16)

    # Layer 1: (TB,784) @ (784,128) -> f32 acc; bias + ReLU in f32.
    h1 = jnp.dot(x, w1_ref[...], preferred_element_type=jnp.float32)
    h1 = jnp.maximum(h1 + b1_ref[...], 0.0)

    # Layer 2 (64 -> padded 128 lanes; padded cols/bias are zero => relu(0)=0).
    h2 = jnp.dot(h1.astype(jnp.bfloat16), w2_ref[...],
                 preferred_element_type=jnp.float32)
    h2 = jnp.maximum(h2 + b2_ref[...], 0.0)

    # Layer 3 (padded rows of w3 are zero; 10 -> 16 output lanes, extras zero).
    out = jnp.dot(h2.astype(jnp.bfloat16), w3_ref[...],
                  preferred_element_type=jnp.float32)
    o_ref[...] = (out + b3_ref[...]).astype(o_ref.dtype)


def pack_params(params):
    """Pack logical f32 params (w:(in,out), b:(1,out)) into padded bf16/f32 layout."""
    w1, b1, w2, b2, w3, b3 = params
    w1p = w1.astype(jnp.bfloat16)                                   # (784,128)
    b1p = b1.astype(jnp.float32)                                    # (1,128)
    w2p = jnp.zeros((H1, H2_PAD), jnp.bfloat16).at[:, :H2].set(w2.astype(jnp.bfloat16))
    b2p = jnp.zeros((1, H2_PAD), jnp.float32).at[:, :H2].set(b2)
    w3p = jnp.zeros((H2_PAD, OUT_PAD), jnp.bfloat16).at[:H2, :OUT].set(
        w3.astype(jnp.bfloat16))
    b3p = jnp.zeros((1, OUT_PAD), jnp.float32).at[:, :OUT].set(b3)
    return (w1p, b1p, w2p, b2p, w3p, b3p)


def _vmem_budget_bytes(tb):
    w_bytes = (IN_DIM * H1 + H1 * H2_PAD + H2_PAD * OUT_PAD) * 2   # bf16 weights
    b_bytes = (H1 + H2_PAD + OUT_PAD) * 4                          # f32 biases
    x_bytes = tb * IN_DIM * 4                                      # f32 x tile
    o_bytes = tb * OUT_PAD * 4                                     # f32 out tile
    # in-kernel intermediates (bf16 x copy, h1/h2 in f32+bf16, out)
    scratch = tb * (IN_DIM * 2 + 3 * H2_PAD * 4 + OUT_PAD * 4)
    # double buffering + compiler headroom
    return 2 * (w_bytes + b_bytes + x_bytes + o_bytes) + scratch + (8 << 20)


def neural_net_forward(x, packed_params, *, tb=1024):
    """x: anything reshapeable to (-1, 784). Returns (B, 10) float32."""
    w1, b1, w2, b2, w3, b3 = packed_params
    x2d = x.reshape(-1, IN_DIM).astype(jnp.float32)
    B = x2d.shape[0]

    # Batch tile: multiple of 16 (bf16 sublane packing), capped at tb.
    TB = min(tb, _round_up(B, 16))
    # For larger batches keep at least 2 grid steps so the pipeline overlaps DMA
    # with compute and both v7x TensorCores get work.
    if B >= 512 and pl.cdiv(B, TB) < 2:
        TB = _round_up(pl.cdiv(B, 2), 16)

    grid = (pl.cdiv(B, TB),)   # ragged last block handled by Pallas masking
    const = lambda shape: pl.BlockSpec(shape, lambda i: (0, 0))

    out_padded = pl.pallas_call(
        mlp_kernel,
        out_shape=jax.ShapeDtypeStruct((B, OUT_PAD), jnp.float32),
        grid=grid,
        in_specs=[
            pl.BlockSpec((TB, IN_DIM), lambda i: (i, 0)),   # x tile, pipelined over batch
            const((IN_DIM, H1)),     const((1, H1)),        # w1, b1 (VMEM-resident)
            const((H1, H2_PAD)),     const((1, H2_PAD)),    # w2, b2 (padded)
            const((H2_PAD, OUT_PAD)), const((1, OUT_PAD)),  # w3, b3 (padded)
        ],
        out_specs=pl.BlockSpec((TB, OUT_PAD), lambda i: (i, 0)),
        compiler_params=pltpu.CompilerParams(
            dimension_semantics=("parallel",),
            vmem_limit_bytes=_vmem_budget_bytes(TB),
        ),
    )(x2d, w1, b1, w2, b2, w3, b3)

    return out_padded[:, :OUT]


def init_params(key):
    """Deterministic init matching the PyTorch module's shapes (weights as (in,out))."""
    k1, k2, k3, k4, k5, k6 = jax.random.split(key, 6)

    def lin(kw, kb, fan_in, fan_out):
        bound = 1.0 / jnp.sqrt(fan_in)
        w = jax.random.uniform(kw, (fan_in, fan_out), jnp.float32, -bound, bound)
        b = jax.random.uniform(kb, (1, fan_out), jnp.float32, -bound, bound)
        return w, b

    w1, b1 = lin(k1, k2, IN_DIM, H1)
    w2, b2 = lin(k3, k4, H1, H2)
    w3, b3 = lin(k5, k6, H2, OUT)
    return (w1, b1, w2, b2, w3, b3)


if __name__ == "__main__":
    key = jax.random.PRNGKey(0)
    k_x, k_p = jax.random.split(key)

    # Small MNIST-like batch: (B, 1, 28, 28) NCHW; forward views it to (B, 784).
    B = 16
    x = jax.random.normal(k_x, (B, 1, 28, 28), jnp.float32)
    params = init_params(k_p)
    packed = pack_params(params)

    out = neural_net_forward(x, packed)
    out = jax.block_until_ready(out)

    # Plain-JAX reference mirroring the kernel's bf16 operand / f32 accumulate scheme.
    w1, b1, w2, b2, w3, b3 = params
    bf = lambda a: a.astype(jnp.bfloat16).astype(jnp.float32)
    x2d = bf(x.reshape(-1, IN_DIM))
    h1 = jnp.maximum(x2d @ bf(w1) + b1, 0.0)
    h2 = jnp.maximum(bf(h1) @ bf(w2) + b2, 0.0)
    ref = bf(h2) @ bf(w3) + b3

    assert out.shape == (B, OUT)
    assert jnp.allclose(out, ref, atol=1e-2, rtol=1e-2), (
        float(jnp.max(jnp.abs(out - ref)))
    )

    print("KERNEL_OK")
</pallas_src>

<mosaic_0001>
module attributes {stable_mosaic.version = 11 : i64} {
  func.func @mlp_kernel(%arg0: i32, %arg1: memref<16x784xf32, #tpu.memory_space<vmem>>, %arg2: memref<784x128xbf16, #tpu.memory_space<vmem>>, %arg3: memref<1x128xf32, #tpu.memory_space<vmem>>, %arg4: memref<128x128xbf16, #tpu.memory_space<vmem>>, %arg5: memref<1x128xf32, #tpu.memory_space<vmem>>, %arg6: memref<128x16xbf16, #tpu.memory_space<vmem>>, %arg7: memref<1x16xf32, #tpu.memory_space<vmem>>, %arg8: memref<16x16xf32, #tpu.memory_space<vmem>>) attributes {dimension_semantics = [#tpu.dimension_semantics<parallel>], iteration_bounds = array<i64: 1>, scalar_prefetch = 0 : i64, scratch_operands = 0 : i64, tpu.core_type = #tpu.core_type<tc>, window_params = [{transform_indices = @transform_0, window_bounds = array<i64: 16, 784>}, {pipeline_mode = #tpu.pipeline_mode<synchronous>, transform_indices = @transform_1, window_bounds = array<i64: 784, 128>}, {pipeline_mode = #tpu.pipeline_mode<synchronous>, transform_indices = @transform_2, window_bounds = array<i64: 1, 128>}, {pipeline_mode = #tpu.pipeline_mode<synchronous>, transform_indices = @transform_3, window_bounds = array<i64: 128, 128>}, {pipeline_mode = #tpu.pipeline_mode<synchronous>, transform_indices = @transform_4, window_bounds = array<i64: 1, 128>}, {pipeline_mode = #tpu.pipeline_mode<synchronous>, transform_indices = @transform_5, window_bounds = array<i64: 128, 16>}, {pipeline_mode = #tpu.pipeline_mode<synchronous>, transform_indices = @transform_6, window_bounds = array<i64: 1, 16>}, {transform_indices = @transform_7, window_bounds = array<i64: 16, 16>}]} {
    %c0 = arith.constant 0 : index
    %c0_0 = arith.constant 0 : index
    %0 = vector.load %arg1[%c0, %c0_0] : memref<16x784xf32, #tpu.memory_space<vmem>>, vector<16x784xf32>
    %1 = arith.truncf %0 : vector<16x784xf32> to vector<16x784xbf16>
    %c0_1 = arith.constant 0 : index
    %c0_2 = arith.constant 0 : index
    %2 = vector.load %arg2[%c0_1, %c0_2] : memref<784x128xbf16, #tpu.memory_space<vmem>>, vector<784x128xbf16>
    %cst = arith.constant dense<0.000000e+00> : vector<16x128xf32>
    %3 = tpu.matmul %1, %2, %cst {dimension_numbers = #tpu.dot_dimension_numbers<[1], [0], [0], [1], [0, 0, 1, 1], [], []>} : vector<16x784xbf16>, vector<784x128xbf16>, vector<16x128xf32> -> vector<16x128xf32>
    %c0_3 = arith.constant 0 : index
    %c0_4 = arith.constant 0 : index
    %4 = vector.load %arg3[%c0_3, %c0_4] : memref<1x128xf32, #tpu.memory_space<vmem>>, vector<1x128xf32>
    %5 = vector.broadcast %4 : vector<1x128xf32> to vector<16x128xf32>
    %6 = arith.addf %3, %5 : vector<16x128xf32>
    %cst_5 = arith.constant 0.000000e+00 : f32
    %7 = vector.broadcast %cst_5 : f32 to vector<16x128xf32>
    %8 = arith.maximumf %6, %7 : vector<16x128xf32>
    %9 = arith.truncf %8 : vector<16x128xf32> to vector<16x128xbf16>
    %c0_6 = arith.constant 0 : index
    %c0_7 = arith.constant 0 : index
    %10 = vector.load %arg4[%c0_6, %c0_7] : memref<128x128xbf16, #tpu.memory_space<vmem>>, vector<128x128xbf16>
    %cst_8 = arith.constant dense<0.000000e+00> : vector<16x128xf32>
    %11 = tpu.matmul %9, %10, %cst_8 {dimension_numbers = #tpu.dot_dimension_numbers<[1], [0], [0], [1], [0, 0, 1, 1], [], []>} : vector<16x128xbf16>, vector<128x128xbf16>, vector<16x128xf32> -> vector<16x128xf32>
    %c0_9 = arith.constant 0 : index
    %c0_10 = arith.constant 0 : index
    %12 = vector.load %arg5[%c0_9, %c0_10] : memref<1x128xf32, #tpu.memory_space<vmem>>, vector<1x128xf32>
    %13 = vector.broadcast %12 : vector<1x128xf32> to vector<16x128xf32>
    %14 = arith.addf %11, %13 : vector<16x128xf32>
    %cst_11 = arith.constant 0.000000e+00 : f32
    %15 = vector.broadcast %cst_11 : f32 to vector<16x128xf32>
    %16 = arith.maximumf %14, %15 : vector<16x128xf32>
    %17 = arith.truncf %16 : vector<16x128xf32> to vector<16x128xbf16>
    %c0_12 = arith.constant 0 : index
    %c0_13 = arith.constant 0 : index
    %18 = vector.load %arg6[%c0_12, %c0_13] : memref<128x16xbf16, #tpu.memory_space<vmem>>, vector<128x16xbf16>
    %cst_14 = arith.constant dense<0.000000e+00> : vector<16x16xf32>
    %19 = tpu.matmul %17, %18, %cst_14 {dimension_numbers = #tpu.dot_dimension_numbers<[1], [0], [0], [1], [0, 0, 1, 1], [], []>} : vector<16x128xbf16>, vector<128x16xbf16>, vector<16x16xf32> -> vector<16x16xf32>
    %c0_15 = arith.constant 0 : index
    %c0_16 = arith.constant 0 : index
    %20 = vector.load %arg7[%c0_15, %c0_16] : memref<1x16xf32, #tpu.memory_space<vmem>>, vector<1x16xf32>
    %21 = vector.broadcast %20 : vector<1x16xf32> to vector<16x16xf32>
    %22 = arith.addf %19, %21 : vector<16x16xf32>
    %c0_17 = arith.constant 0 : index
    %c0_18 = arith.constant 0 : index
    %23 = vector.load %arg8[%c0_17, %c0_18] : memref<16x16xf32, #tpu.memory_space<vmem>>, vector<16x16xf32>
    tpu.vector_store %arg8[%c0_17, %c0_18], %22 {strides = array<i32>} : memref<16x16xf32, #tpu.memory_space<vmem>>, vector<16x16xf32>,
    return
  }
  func.func @transform_0(%arg0: i32) -> (i32, i32) {
    %c0_i32 = arith.constant 0 : i32
    %c0_i32_0 = arith.constant 0 : i32
    return %arg0, %c0_i32 : i32, i32
  }
  func.func @transform_1(%arg0: i32) -> (i32, i32) {
    %c0_i32 = arith.constant 0 : i32
    %c0_i32_0 = arith.constant 0 : i32
    %c0_i32_1 = arith.constant 0 : i32
    return %c0_i32, %c0_i32_0 : i32, i32
  }
  func.func @transform_2(%arg0: i32) -> (i32, i32) {
    %c0_i32 = arith.constant 0 : i32
    %c0_i32_0 = arith.constant 0 : i32
    %c0_i32_1 = arith.constant 0 : i32
    return %c0_i32, %c0_i32_0 : i32, i32
  }
  func.func @transform_3(%arg0: i32) -> (i32, i32) {
    %c0_i32 = arith.constant 0 : i32
    %c0_i32_0 = arith.constant 0 : i32
    %c0_i32_1 = arith.constant 0 : i32
    return %c0_i32, %c0_i32_0 : i32, i32
  }
  func.func @transform_4(%arg0: i32) -> (i32, i32) {
    %c0_i32 = arith.constant 0 : i32
    %c0_i32_0 = arith.constant 0 : i32
    %c0_i32_1 = arith.constant 0 : i32
    return %c0_i32, %c0_i32_0 : i32, i32
  }
  func.func @transform_5(%arg0: i32) -> (i32, i32) {
    %c0_i32 = arith.constant 0 : i32
    %c0_i32_0 = arith.constant 0 : i32
    %c0_i32_1 = arith.constant 0 : i32
    return %c0_i32, %c0_i32_0 : i32, i32
  }
  func.func @transform_6(%arg0: i32) -> (i32, i32) {
    %c0_i32 = arith.constant 0 : i32
    %c0_i32_0 = arith.constant 0 : i32
    %c0_i32_1 = arith.constant 0 : i32
    return %c0_i32, %c0_i32_0 : i32, i32
  }
  func.func @transform_7(%arg0: i32) -> (i32, i32) {
    %c0_i32 = arith.constant 0 : i32
    %c0_i32_0 = arith.constant 0 : i32
    return %arg0, %c0_i32 : i32, i32
  }
}

</mosaic_0001>

<bundles_post_ra>
// kernel: tpu_custom_call.1
= control target key start
LH: loop header
LB: loop body
LE: loop exit
PB: predicated region body
PF: predicated region fallthrough
CT: control target
= control target key end

     0   :  { %12 = vsyncpa [#allocation3], 0  ;;  %s1305_s0 = inlined_call_operand.hbm [shape: f32[16,784], index: 0, kind: input, shape index: {}]   ;;  %s1306_s1 = inlined_call_operand.hbm [shape: bf16[784,128], index: 1, kind: input, shape index: {}]   ;;  %s1307_s2 = inlined_call_operand.vmem [shape: f32[1,128], index: 2, kind: input, shape index: {}]   ;;  %s1308_s3 = inlined_call_operand.vmem [shape: bf16[128,128], index: 3, kind: input, shape index: {}]   ;;  %s1309_s4 = inlined_call_operand.vmem [shape: f32[1,128], index: 4, kind: input, shape index: {}]   ;;  %s1310_s5 = inlined_call_operand.vmem [shape: bf16[128,16], index: 5, kind: input, shape index: {}]   ;;  %s1311_s6 = inlined_call_operand.vmem [shape: f32[1,16], index: 6, kind: input, shape index: {}]   ;;  %s1312_s7 = inlined_call_operand.hbm [shape: f32[16,16], index: 7, kind: output, shape index: {}]  }
   0x1   :  { %13 = vsyncpa [#allocation6], 0 }
   0x2   :  { %14 = vsyncpa [#allocation4], 0  ;;  %s19_s26 = sshll.u32 %s1305_s0, 4  ;;  %s1187_s27 = smov [#allocation2]   ;;  %s20_s26 = int_to_ptr.hbm [resolvable:$true] %s19_s26 }
   0x3   :  { %s21_s28 = sshll.u32 %s1187_s27, 4  ;;  %s32_s8 = sshll.u32 %s1306_s1, 4  ;;  %s22_s28 = int_to_ptr.vmem [resolvable:$true] %s21_s28  ;;  %s33_s8 = int_to_ptr.hbm [resolvable:$true] %s32_s8 }
   0x4   :  { %s1188_s9 = smov 896   ;;  %s1189_s10 = smov 56  }
   0x5   :  { %27 = dma.hbm_to_vmem [thread:$0]  %s20_s26, 1792, %s22_s28, [#allocation3], %s1188_s9, %s1188_s9, %s1189_s10  }
   0x6   :  { %s1190_s11 = smov [#allocation5]   ;;  %s1191_s13 = smov 64  }
   0x7   :  { %s34_s12 = sshll.u32 %s1190_s11, 4  ;;  %s1192_s14 = smov 4   ;;  %s35_s12 = int_to_ptr.vmem [resolvable:$true] %s34_s12 }
   0x8   :  { %40 = dma.hbm_to_vmem [thread:$0]  %s33_s8, 6272, %s35_s12, [#allocation6], %s1191_s13, %s1191_s13, %s1192_s14  }
   0x9   :  { %1181 = dma.done.wait [#allocation3], 1792  }
   0xa   :  { %1182 = vsyncadd [#allocation3], 4294965504 }
   0xb   :  { %1183 = dma.done.wait [#allocation6], 6272  }
   0xc   :  { %1184 = vsyncadd [#allocation6], 4294961024  ;;  %v1039_v0 = vld [vmem:[#allocation5 + $0x38] sm:$0xff]  ;;  %v1038_v4 = vld [vmem:[#allocation5 + $0x30] sm:$0xff]  ;;  %vm477_vm0 = vcmask 130048   ;;  %s1194_s27 = smov 128  }
   0xd   :  { %v1047_v1 = vld [vmem:[#allocation5 + $0x78] sm:$0xff]  ;;  %481 = vmatpush.bf16.msra.mxu0 %v1039_v0  ;;  %v1046_v5 = vld [vmem:[#allocation5 + $0x70] sm:$0xff]  ;;  %v1037_v8 = vld [vmem:[#allocation5 + $0x28] sm:$0xff]  ;;  %s1195_s28 = smov 8  }
   0xe   :  { %v1055_v2 = vld [vmem:[#allocation5 + $0xb8] sm:$0xff]  ;;  %495 = vmatpush.bf16.msra.mxu1 %v1047_v1  ;;  %v1054_v6 = vld [vmem:[#allocation5 + $0xb0] sm:$0xff]  ;;  %v1045_v9 = vld [vmem:[#allocation5 + $0x68] sm:$0xff] }
   0xf   :  { %v1063_v3 = vld [vmem:[#allocation5 + $0xf8] sm:$0xff]  ;;  %509 = vmatpush.bf16.msra.mxu2 %v1055_v2  ;;  %v1062_v7 = vld [vmem:[#allocation5 + $0xf0] sm:$0xff]  ;;  %v1053_v10 = vld [vmem:[#allocation5 + $0xa8] sm:$0xff] }
  0x10   :  { %523 = vmatpush.bf16.msra.mxu3 %v1063_v3  ;;  %v1061_v11 = vld [vmem:[#allocation5 + $0xe8] sm:$0xff]  ;;  %v1036_v12 = vld [vmem:[#allocation5 + $0x20] sm:$0xff]  ;;  %v1035_v16 = vld [vmem:[#allocation5 + $0x18] sm:$0xff] }
  0x11   :  { %482 = vmatpush.bf16.msra.mxu0 %v1038_v4  ;;  %v1044_v13 = vld [vmem:[#allocation5 + $0x60] sm:$0xff]  ;;  %v1043_v17 = vld [vmem:[#allocation5 + $0x58] sm:$0xff]  ;;  %v1034_v20 = vld [vmem:[#allocation5 + $0x10] sm:$0xff] }
  0x12   :  { %496 = vmatpush.bf16.msra.mxu1 %v1046_v5  ;;  %v1052_v14 = vld [vmem:[#allocation5 + $0xa0] sm:$0xff]  ;;  %v1051_v18 = vld [vmem:[#allocation5 + $0x98] sm:$0xff]  ;;  %v1042_v21 = vld [vmem:[#allocation5 + $0x50] sm:$0xff] }
  0x13   :  { %510 = vmatpush.bf16.msra.mxu2 %v1054_v6  ;;  %v1060_v15 = vld [vmem:[#allocation5 + $0xe0] sm:$0xff]  ;;  %v1059_v19 = vld [vmem:[#allocation5 + $0xd8] sm:$0xff]  ;;  %v1050_v22 = vld [vmem:[#allocation5 + $0x90] sm:$0xff] }
  0x14   :  { %524 = vmatpush.bf16.msra.mxu3 %v1062_v7  ;;  %v1058_v23 = vld [vmem:[#allocation5 + $0xd0] sm:$0xff]  ;;  %v1033_v24 = vld [vmem:[#allocation5 + $0x8] sm:$0xff]  ;;  %v1032_v28 = vld [vmem:[#allocation5] sm:$0xff] }
  0x15   :  { %483 = vmatpush.bf16.msra.mxu0 %v1037_v8  ;;  %v1041_v25 = vld [vmem:[#allocation5 + $0x48] sm:$0xff]  ;;  %v1040_v29 = vld [vmem:[#allocation5 + $0x40] sm:$0xff]  ;;  %v60_v30 = vld [vmem:[#allocation2] sm:$0xff] }
  0x16   :  { %497 = vmatpush.bf16.msra.mxu1 %v1045_v9  ;;  %v1049_v26 = vld [vmem:[#allocation5 + $0x88] sm:$0xff]  ;;  %v61_v32 = vld [vmem:[#allocation2 + $0x8] sm:$0xff]  ;;  %v68_v33 = vld [vmem:[#allocation2 + $0x40] sm:$0xff] }
  0x17   :  { %511 = vmatpush.bf16.msra.mxu2 %v1053_v10  ;;  %v1057_v27 = vld [vmem:[#allocation5 + $0xc8] sm:$0xff]  ;;  %v1071_v34 = vld [vmem:[#allocation5 + $0x138] sm:$0xff]  ;;  %v1048_v36 = vld [vmem:[#allocation5 + $0x80] sm:$0xff]  ;;  %v75_v43 = vpack.c.bf16 %v68_v33, %v61_v32 }
  0x18   :  { %525 = vmatpush.bf16.msra.mxu3 %v1061_v11  ;;  %v67_v31 = vld [vmem:[#allocation2 + $0x38] sm:$0xff]  ;;  %v1079_v35 = vld [vmem:[#allocation5 + $0x178] sm:$0xff]  ;;  %v1056_v37 = vld [vmem:[#allocation5 + $0xc0] sm:$0xff] }
  0x19   :  { %484 = vmatpush.bf16.msra.mxu0 %v1036_v12  ;;  %v62_v38 = vld [vmem:[#allocation2 + $0x10] sm:$0xff]  ;;  %v69_v39 = vld [vmem:[#allocation2 + $0x48] sm:$0xff]  ;;  %v74_v40 = vpack.c.bf16 %v67_v31, %v60_v30  ;;  %v63_v41 = vld [vmem:[#allocation2 + $0x18] sm:$0xff] }
  0x1a   :  { %498 = vmatpush.bf16.msra.mxu1 %v1044_v13  ;;  %v70_v42 = vld [vmem:[#allocation2 + $0x50] sm:$0xff]  ;;  %v1070_v45 = vld [vmem:[#allocation5 + $0x130] sm:$0xff]  ;;  %v76_v47 = vpack.c.bf16 %v69_v39, %v62_v38  ;;  %v1069_v49 = vld [vmem:[#allocation5 + $0x128] sm:$0xff] }
  0x1b   :  { %512 = vmatpush.bf16.msra.mxu2 %v1052_v14  ;;  %v1080_v44 = vld [vmem:[#allocation5 + $0x180] sm:$0xff]  ;;  %v1078_v46 = vld [vmem:[#allocation5 + $0x170] sm:$0xff]  ;;  %v77_v48 = vpack.c.bf16 %v70_v42, %v63_v41  ;;  %v1077_v50 = vld [vmem:[#allocation5 + $0x168] sm:$0xff] }
  0x1c   :  { %526 = vmatpush.bf16.msra.mxu3 %v1060_v15  ;;  %v1068_v51 = vld [vmem:[#allocation5 + $0x120] sm:$0xff]  ;;  %v1067_v53 = vld [vmem:[#allocation5 + $0x118] sm:$0xff]  ;;  %v1066_v57 = vld [vmem:[#allocation5 + $0x110] sm:$0xff] }
  0x1d   :  { %485 = vmatpush.bf16.msra.mxu0 %v1035_v16  ;;  %v1076_v52 = vld [vmem:[#allocation5 + $0x160] sm:$0xff]  ;;  %v1075_v54 = vld [vmem:[#allocation5 + $0x158] sm:$0xff]  ;;  %v1074_v58 = vld [vmem:[#allocation5 + $0x150] sm:$0xff] }
  0x1e   :  { %499 = vmatpush.bf16.msra.mxu1 %v1043_v17  ;;  %v66_v55 = vld [vmem:[#allocation2 + $0x30] sm:$0xff]  ;;  %v73_v56 = vld [vmem:[#allocation2 + $0x68] sm:$0xff]  ;;  %v1065_v60 = vld [vmem:[#allocation5 + $0x108] sm:$0xff] }
  0x1f   :  { %513 = vmatpush.bf16.msra.mxu2 %v1051_v18  ;;  %v80_v59 = vpack.c.bf16 %v73_v56, %v66_v55  ;;  %v1073_v61 = vld [vmem:[#allocation5 + $0x148] sm:$0xff]  ;;  %v1064_v62 = vld [vmem:[#allocation5 + $0x100] sm:$0xff]  ;;  %v64_v0 = vld [vmem:[#allocation2 + $0x20] sm:$0xff] }
  0x20   :  { %527 = vmatpush.bf16.msra.mxu3 %v1059_v19  ;;  %v1072_v63 = vld [vmem:[#allocation5 + $0x140] sm:$0xff]  ;;  %v71_v1 = vld [vmem:[#allocation2 + $0x58] sm:$0xff]  ;;  %v65_v2 = vld [vmem:[#allocation2 + $0x28] sm:$0xff] }
  0x21   :  { %486 = vmatpush.bf16.msra.mxu0 %v1034_v20  ;;  %v72_v3 = vld [vmem:[#allocation2 + $0x60] sm:$0xff]  ;;  %v78_v4 = vpack.c.bf16 %v71_v1, %v64_v0  ;;  %v1088_v6 = vld [vmem:[%s1308_s3 + $0x38] sm:$0xff]  ;;  %v1087_v7 = vld [vmem:[%s1308_s3 + $0x30] sm:$0xff] }
  0x22   :  { %500 = vmatpush.bf16.msra.mxu1 %v1042_v21  ;;  %v79_v5 = vpack.c.bf16 %v72_v3, %v65_v2  ;;  %v1086_v8 = vld [vmem:[%s1308_s3 + $0x28] sm:$0xff]  ;;  %v1085_v9 = vld [vmem:[%s1308_s3 + $0x20] sm:$0xff]  ;;  %v1084_v10 = vld [vmem:[%s1308_s3 + $0x18] sm:$0xff] }
  0x23   :  { %514 = vmatpush.bf16.msra.mxu2 %v1050_v22  ;;  %v1083_v11 = vld [vmem:[%s1308_s3 + $0x10] sm:$0xff]  ;;  %v1082_v12 = vld [vmem:[%s1308_s3 + $0x8] sm:$0xff]  ;;  %v1081_v16 = vld [vmem:[%s1308_s3] sm:$0xff] }
  0x24   :  { %528 = vmatpush.bf16.msra.mxu3 %v1058_v23  ;;  %v1106_v17 = vld [vmem:[%s1307_s2] ss:$0 sm:$0xff]  ;;  %v1096_v18 = vld [vmem:[%s1310_s5 + $0x38] sm:$0xff]  ;;  %v1095_v20 = vld [vmem:[%s1310_s5 + $0x30] sm:$0xff] }
  0x25   :  { %487 = vmatpush.bf16.msra.mxu0 %v1033_v24  ;;  %v1107_v55 = vld [vmem:[%s1309_s4] ss:$0 sm:$0xff]  ;;  %s757_s4 = sshll.u32 %s1312_s7, 4  ;;  %s758_s4 = int_to_ptr.hbm [resolvable:$true] %s757_s4 }
  0x26   :  { %501 = vmatpush.bf16.msra.mxu1 %v1041_v25  ;;  %v1094_v25 = vld [vmem:[%s1310_s5 + $0x28] sm:$0xff] }
  0x27   :  { %515 = vmatpush.bf16.msra.mxu2 %v1049_v26 }
  0x28   :  { %529 = vmatpush.bf16.msra.mxu3 %v1057_v27 }
  0x29   :  { %488 = vmatpush.bf16.msra.mxu0 %v1032_v28 }
  0x2a   :  { %502 = vmatpush.bf16.msra.mxu1 %v1040_v29  ;;  %v1093_v29 = vld [vmem:[%s1310_s5 + $0x20] sm:$0xff] }
  0x2b   :  { %516 = vmatpush.bf16.msra.mxu2 %v1048_v36 }
  0x2c   :  { %530 = vmatpush.bf16.msra.mxu3 %v1056_v37  ;;  %489 = vmatmul.bf16.vlgmr.msra.gmra.mxu0 %v74_v40 }
  0x2d   :  { %537 = vmatpush.bf16.msrb.mxu0 %v1071_v34  ;;  %503 = vmatmul.bf16.vlgmr.msra.gmra.mxu1 %v75_v43 }
  0x2e   :  { %551 = vmatpush.bf16.msrb.mxu1 %v1079_v35  ;;  %517 = vmatmul.bf16.vlgmr.msra.gmra.mxu2 %v76_v47 }
  0x2f   :  { %572 = vmatpush.bf16.msrb.mxu2 %v1080_v44  ;;  %531 = vmatmul.bf16.vlgmr.msra.gmra.mxu3 %v77_v48 }
  0x30   :  { %650 = vmatpush.bf16.msrb.mxu3 %v1088_v6 }
  0x31   :  { %538 = vmatpush.bf16.msrb.mxu0 %v1070_v45 }
  0x32   :  { %552 = vmatpush.bf16.msrb.mxu1 %v1078_v46 }
  0x33   :  { %735 = vmatpush.bf16.msra.mxu2 %v1096_v18 }
  0x34   :  { %651 = vmatpush.bf16.msrb.mxu3 %v1087_v7 }
  0x35   :  { %539 = vmatpush.bf16.msrb.mxu0 %v1069_v49 }
  0x36   :  { %553 = vmatpush.bf16.msrb.mxu1 %v1077_v50  ;;  %v1092_v50 = vld [vmem:[%s1310_s5 + $0x18] sm:$0xff] }
  0x37   :  { %736 = vmatpush.bf16.msra.mxu2 %v1095_v20 }
  0x38   :  { %652 = vmatpush.bf16.msrb.mxu3 %v1086_v8 }
  0x39   :  { %540 = vmatpush.bf16.msrb.mxu0 %v1068_v51  ;;  %v1091_v51 = vld [vmem:[%s1310_s5 + $0x10] sm:$0xff] }
  0x3a   :  { %554 = vmatpush.bf16.msrb.mxu1 %v1076_v52  ;;  %v1090_v52 = vld [vmem:[%s1310_s5 + $0x8] sm:$0xff] }
  0x3b   :  { %737 = vmatpush.bf16.msra.mxu2 %v1094_v25 }
  0x3c   :  { %653 = vmatpush.bf16.msrb.mxu3 %v1085_v9 }
  0x3d   :  { %541 = vmatpush.bf16.msrb.mxu0 %v1067_v53  ;;  %v1089_v53 = vld [vmem:[%s1310_s5] sm:$0xff]  ;;  %s1193_s5 = smov [#allocation7]  }
  0x3e   :  { %555 = vmatpush.bf16.msrb.mxu1 %v1075_v54  ;;  %967 = vmatmul.msk.bf16.vlgmr.msrb.gmra.mxu2 %vm477_vm0, %v80_v59  ;;  %s755_s24 = sshll.u32 %s1193_s5, 4  ;;  %s756_s24 = int_to_ptr.vmem [resolvable:$true] %s755_s24 }
  0x3f   :  { %738 = vmatpush.bf16.msra.mxu2 %v1093_v29 }
  0x40   :  { %654 = vmatpush.bf16.msrb.mxu3 %v1084_v10 }
  0x41   :  { %542 = vmatpush.bf16.msrb.mxu0 %v1066_v57 }
  0x42   :  { %556 = vmatpush.bf16.msrb.mxu1 %v1074_v58 }
  0x43   :  { %739 = vmatpush.bf16.msra.mxu2 %v1092_v50 }
  0x44   :  { %655 = vmatpush.bf16.msrb.mxu3 %v1083_v11 }
  0x45   :  { %543 = vmatpush.bf16.msrb.mxu0 %v1065_v60 }
  0x46   :  { %557 = vmatpush.bf16.msrb.mxu1 %v1073_v61 }
  0x47   :  { %740 = vmatpush.bf16.msra.mxu2 %v1091_v51 }
  0x48   :  { %656 = vmatpush.bf16.msrb.mxu3 %v1082_v12 }
  0x49   :  { %544 = vmatpush.bf16.msrb.mxu0 %v1064_v62  ;;  %v1108_v62 = vld [vmem:[%s1311_s6] ss:$0 sm:$0xff] }
  0x4a   :  { %558 = vmatpush.bf16.msrb.mxu1 %v1072_v63 }
  0x4b   :  { %741 = vmatpush.bf16.msra.mxu2 %v1090_v52 }
  0x4c   :  { %545 = vmatmul.bf16.vlgmr.msrb.gmra.mxu0 %v78_v4  ;;  %657 = vmatpush.bf16.msrb.mxu3 %v1081_v16 }
  0x4d   :  { %559 = vmatmul.bf16.vlgmr.msrb.gmra.mxu1 %v79_v5 }
  0x4f   :  { %742 = vmatpush.bf16.msra.mxu2 %v1089_v53 }
  0xa9   :  { %v490_v13 = vpop.f32.mrf.mxu0 }
  0xaa   :  { %v504_v14 = vpop.f32.mrf.mxu1  ;;  %v491_v19 = vadd.f32 %v1106_v17, %v490_v13 }
  0xac   :  { %v505_v24 = vadd.f32 %v504_v14, %v491_v19 }
  0xb1   :  { %v518_v15 = vpop.f32.mrf.mxu2  ;;  %v492_v21 = vpop.f32.mrf.mxu0 }
  0xb2   :  { %v506_v22 = vpop.f32.mrf.mxu1  ;;  %v532_v26 = vpop.f32.mrf.mxu3  ;;  %v493_v27 = vadd.f32 %v1106_v17, %v492_v21  ;;  %v519_v28 = vadd.f32 %v518_v15, %v505_v24 }
  0xb4   :  { %v507_v30 = vadd.f32 %v506_v22, %v493_v27  ;;  %v533_v33 = vadd.f32 %v532_v26, %v519_v28 }
  0xb9   :  { %v520_v23 = vpop.f32.mrf.mxu2 }
  0xba   :  { %v521_v35 = vadd.f32 %v520_v23, %v507_v30  ;;  %v534_v37 = vpop.f32.mrf.mxu3 }
  0xbc   :  { %v535_v38 = vadd.f32 %v534_v37, %v521_v35 }
  0xc1   :  { %v574_v34 = vpop.f32.mrf.mxu2 }
  0xc9   :  { %v546_v31 = vpop.f32.mrf.mxu0  ;;  %v576_v45 = vpop.f32.mrf.mxu2 }
  0xca   :  { %v560_v32 = vpop.f32.mrf.mxu1  ;;  %v547_v36 = vadd.f32 %v546_v31, %v533_v33 }
  0xcc   :  { %v561_v39 = vadd.f32 %v560_v32, %v547_v36 }
  0xce   :  { %v575_v43 = vadd.f32 %v574_v34, %v561_v39 }
  0xd0   :  { %v579_v47 = vmax.f32 %v575_v43, 0.0 }
  0xd1   :  { %v548_v40 = vpop.f32.mrf.mxu0 }
  0xd2   :  { %v549_v41 = vadd.f32 %v548_v40, %v535_v38  ;;  %v562_v42 = vpop.f32.mrf.mxu1 }
  0xd4   :  { %v563_v44 = vadd.f32 %v562_v42, %v549_v41 }
  0xd6   :  { %v577_v46 = vadd.f32 %v576_v45, %v563_v44 }
  0xd8   :  { %v580_v48 = vmax.f32 %v577_v46, 0.0 }
  0xda   :  { %v581_v49 = vpack.c.bf16 %v580_v48, %v579_v47 }
  0xdc   :  { %658 = vmatmul.bf16.vlgmr.msrb.gmra.mxu3 %v581_v49 }
 0x15f   :  { %v659_v54 = vpop.f32.mrf.mxu3 }
 0x160   :  { %v660_v56 = vadd.f32 %v1107_v55, %v659_v54 }
 0x162   :  { %v664_v59 = vmax.f32 %v660_v56, 0.0 }
 0x167   :  { %v661_v57 = vpop.f32.mrf.mxu3 }
 0x168   :  { %v662_v58 = vadd.f32 %v1107_v55, %v661_v57 }
 0x16a   :  { %v665_v60 = vmax.f32 %v662_v58, 0.0 }
 0x16c   :  { %v666_v61 = vpack.c.bf16 %v665_v60, %v664_v59 }
 0x16e   :  { %743 = vmatmul.bf16.vlgmr.msra.gmra.mxu2 %v666_v61 }
 0x1f1   :  { %v744_v63 = vpop.f32.mrf.mxu2 }
 0x1f2   :  { %v745_v0 = vadd.f32 %v1108_v62, %v744_v63 }
 0x1f4   :  { %749 = vst.msk [vmem:[#allocation7] sm:$0xff] %vm477_vm0, %v745_v0 }
 0x1f9   :  { %v746_v1 = vpop.f32.mrf.mxu2 }
 0x1fa   :  { %v747_v2 = vadd.f32 %v1108_v62, %v746_v1 }
 0x1fc   :  { %750 = vst.msk [vmem:[#allocation7 + $0x8] sm:$0xff] %vm477_vm0, %v747_v2 }
 0x1fd   :  { %763 = dma.vmem_to_hbm [thread:$0]  %s756_s24, 256, %s758_s4, [#allocation4], %s1194_s27, %s1194_s27, %s1195_s28  }
 0x1fe   :  { %1185 = dma.done.wait [#allocation4], 256  }
 0x1ff   :  { %1186 = vsyncadd [#allocation4], 4294967040 }
 0x200   :  { %768 = vsyncpa [#allocation3], 1 }
 0x201   :  { %769 = vsyncpa [#allocation6], 1 }
 0x202   :  { %770 = vsyncpa [#allocation4], 1 }

</bundles_post_ra>
